<compile_context>
chip_gen: v7x
topology: tpu7x:2x2x1
jax: 0.10.0
libtpu: 0.0.40
codegen_flags: <defaults>
</compile_context>

<pallas_src>
import functools
import math

import numpy as np
import jax
import jax.numpy as jnp
from jax import lax
from jax.experimental import pallas as pl
from jax.experimental.pallas import tpu as pltpu

_BIG = 1e9


def _closure_and_reach(work_ref, n_sq, acc_dtype):
    """Boolean transitive closure of the 0/1 matrix seeded in `work_ref` via
    `n_sq >= 1` boolean squarings on the MXU.  The last squaring is fused: its
    (A@A > 0) result is returned live instead of stored back and reloaded.

    Invariant: every non-isolated row keeps its self-loop (diagonal 1), so
    A @ A already contains A and the update is simply (A @ A > 0).  Do NOT
    mask the diagonal out upstream."""
    wdt = work_ref.dtype

    def body(_, carry):
        a = work_ref[...]
        a2 = jnp.dot(a, a, preferred_element_type=acc_dtype)   # exact 0/1 counts
        work_ref[...] = (a2 > 0).astype(wdt)
        return carry

    lax.fori_loop(0, n_sq - 1, body, 0)
    a = work_ref[...]
    return jnp.dot(a, a, preferred_element_type=acc_dtype) > 0


def _dbscan_kernel_ms1(meta_ref, x_ref, thr_ref, gidx_ref, labels_ref, work_ref,
                       *, acc_dtype):
    """min_samples == 1: every in-group point is a core point, so the closure
    of the eps-graph is already the full point<->cluster reachability."""
    f32 = jnp.float32
    g = pl.program_id(0)
    x = x_ref[0]                         # (G, F) per-group-centered coords
    thr = thr_ref[0]                     # (1, G) eps^2 - r2_j  (-BIG for padding)
    gidx = gidx_ref[0]                   # (G, 1) global point index (BIG for padding)
    valid_c = gidx < f32(_BIG)           # (G, 1)

    # ||xi - xj||^2 <= eps^2  <=>  r2_i - 2<xi,xj> <= eps^2 - r2_j (precomputed).
    gram = lax.dot_general(x, x, (((1,), (1,)), ((), ())),
                           preferred_element_type=f32)          # K=8: noise vs closure
    r2c = jnp.sum(x * x, axis=1, keepdims=True)                 # (G, 1)
    adj = valid_c & ((r2c - 2.0 * gram) <= thr)                 # self-loops kept
    work_ref[...] = adj.astype(work_ref.dtype)

    nit = meta_ref[g, 2]                                        # ceil(log2(n_g))
    reach = _closure_and_reach(work_ref, nit, acc_dtype)        # reach[k, i]

    cand = jnp.where(reach, gidx, f32(_BIG))
    lab = jnp.min(cand, axis=0, keepdims=True)                  # (1, G) min member idx
    # For connected components the column sum of the closure IS the cluster size.
    size = jnp.sum(reach.astype(f32), axis=0, keepdims=True)    # (1, G)
    min_size = meta_ref[g, 0].astype(f32)
    keep = (lab < f32(_BIG)) & (size >= min_size)
    labels_ref[...] = jnp.where(keep, lab, f32(-1.0)).astype(labels_ref.dtype)[None]


def _dbscan_kernel_gen(meta_ref, x_ref, thr_ref, gidx_ref, labels_ref,
                       work_ref, adjc_ref, *, acc_dtype):
    """General min_samples: closure of the core-core subgraph, then one-hop
    border attach reach = closure @ (adj * core_col)."""
    f32 = jnp.float32
    g = pl.program_id(0)
    wdt = work_ref.dtype
    x = x_ref[0]
    thr = thr_ref[0]
    gidx = gidx_ref[0]
    valid_c = gidx < f32(_BIG)

    gram = lax.dot_general(x, x, (((1,), (1,)), ((), ())),
                           preferred_element_type=f32)
    r2c = jnp.sum(x * x, axis=1, keepdims=True)
    adj = valid_c & ((r2c - 2.0 * gram) <= thr)

    # Neighbor counts via MXU matvecs on the 0/1 adjacency (exact), instead of
    # keeping an f32 copy live and reducing on the VPU/XLU.
    work_ref[...] = adj.astype(wdt)
    a = work_ref[...]
    ones_c = jnp.ones((a.shape[0], 1), wdt)
    nnbr_c = jnp.dot(a, ones_c, preferred_element_type=acc_dtype).astype(f32)
    nnbr_r = lax.dot_general(ones_c, a, (((0,), (0,)), ((), ())),
                             preferred_element_type=acc_dtype).astype(f32)
    mpts = meta_ref[g, 1].astype(f32)
    core_c = nnbr_c >= mpts            # padded points have 0 neighbors -> never core
    core_r = nnbr_r >= mpts

    adjc_ref[...] = (adj & core_c).astype(wdt)          # adj[j,i] & core_j
    core_adj = adj & core_c & core_r                    # core-core subgraph
    work_ref[...] = core_adj.astype(wdt)

    nit = meta_ref[g, 2]
    closure = _closure_and_reach(work_ref, nit, acc_dtype)
    # reach[k, i]: point i reachable from core k via a core chain + one hop.
    reach = jnp.dot(closure.astype(wdt), adjc_ref[...],
                    preferred_element_type=acc_dtype) > 0

    cand = jnp.where(reach, gidx, f32(_BIG))
    lab = jnp.min(cand, axis=0, keepdims=True)
    clustered = lab < f32(_BIG)
    # Border points may attach to different representative cores, so cluster
    # sizes need the member matrix here (only the ms1 path can use column sums).
    member = ((cand == lab) & clustered).astype(f32)
    size_per_label = jnp.sum(member, axis=1, keepdims=True)
    size_per_point = jnp.sum(member * size_per_label, axis=0, keepdims=True)
    min_size = meta_ref[g, 0].astype(f32)
    keep = clustered & (size_per_point >= min_size)
    labels_ref[...] = jnp.where(keep, lab, f32(-1.0)).astype(labels_ref.dtype)[None]


def dbscan_fragmenter(data, *, cluster_classes=(0, 1, 2, 3), eps=1.999,
                      min_samples=1, min_size=3, num_classes=4,
                      batch_col=0, coords_col=(1, 4), adj_dtype=jnp.bfloat16):
    """Per-voxel int32 cluster labels (-1 = noise / filtered).

    The label of a clustered voxel is the minimum reachable core-point original
    index (== the minimum member index when min_samples == 1), so the index
    sets {i : labels[i] == u} reproduce the torch module's clusters."""
    cluster_classes = list(cluster_classes)
    if not isinstance(eps, (list, tuple)):
        eps = [eps] * len(cluster_classes)
    if not isinstance(min_samples, (list, tuple)):
        min_samples = [min_samples] * len(cluster_classes)
    if not isinstance(min_size, (list, tuple)):
        min_size = [min_size] * len(cluster_classes)
    assert len(eps) == len(min_samples) == len(min_size) == len(cluster_classes)

    data_np = np.asarray(data, np.float32)
    n = data_np.shape[0]
    labels_out = np.full((n,), -1, np.int32)
    if n == 0:
        return jnp.asarray(labels_out)

    bid = data_np[:, batch_col]
    coords_all = data_np[:, coords_col[0]:coords_col[1]]
    seg = data_np[:, -1]

    # Block-diagonal structure: one independent DBSCAN problem per
    # (batch, class) group (same loops the torch module runs in numpy).
    groups = []
    for b in np.unique(bid):
        bmask = bid == b
        for k, c in enumerate(cluster_classes):
            sel = np.where(bmask & (seg == float(c)))[0]
            if len(sel):
                groups.append((sel, float(eps[k]), int(min_samples[k]),
                               int(min_size[k])))
    if not groups:
        return jnp.asarray(labels_out)

    n_groups = len(groups)
    gmax_raw = max(len(g[0]) for g in groups)
    G = int(math.ceil(max(gmax_raw, 1) / 128.0)) * 128     # lane-aligned group tile
    F = 8                                                   # coords padded to 8 lanes

    x = np.zeros((n_groups, G, F), np.float32)
    thr = np.full((n_groups, 1, G), -_BIG, np.float32)      # padding: no edges at all
    gidx = np.full((n_groups, G, 1), _BIG, np.float32)      # padding: never a label
    meta = np.ones((n_groups, 3), np.int32)                 # [min_size, min_samples, n_sq]
    for gi, (sel, e, mpts, msz) in enumerate(groups):
        v = coords_all[sel]
        # Per-group centering (distance preserving) keeps the expanded-form
        # comparison r2_i - 2<xi,xj> <= eps^2 - r2_j well conditioned in f32.
        v = v - v.mean(axis=0, keepdims=True)
        m = len(sel)
        x[gi, :m, :v.shape[1]] = v
        r2 = (v * v).sum(axis=1)
        thr[gi, 0, :m] = e * e - r2
        gidx[gi, :m, 0] = sel
        n_sq = max(1, int(math.ceil(math.log2(max(m, 2)))))
        meta[gi] = (msz, mpts, n_sq)

    all_ms1 = all(int(m) == 1 for m in min_samples)
    acc_dtype = jnp.int32 if jnp.issubdtype(adj_dtype, jnp.integer) else jnp.float32
    if all_ms1:
        kernel = functools.partial(_dbscan_kernel_ms1, acc_dtype=acc_dtype)
        scratch = [pltpu.VMEM((G, G), adj_dtype)]
        n_big = 1
    else:
        kernel = functools.partial(_dbscan_kernel_gen, acc_dtype=acc_dtype)
        scratch = [pltpu.VMEM((G, G), adj_dtype), pltpu.VMEM((G, G), adj_dtype)]
        n_big = 2

    # Generation-aware scoped-VMEM budget: never clamp to v7x's 64 MiB physical
    # size; leave ~8 MiB headroom for Mosaic's internal scratch.
    item = jnp.dtype(adj_dtype).itemsize
    est = (n_big * item + 16) * G * G + 4 * G * (F + 4) * 4 + (2 << 20)
    try:
        phys = int(pltpu.get_tpu_info().vmem_capacity_bytes)
    except Exception:
        phys = 128 * 1024 * 1024
    vmem_limit = int(min(phys - (8 << 20), max(32 << 20, est)))

    nit_max = int(meta[:, 2].max())
    cost = pl.CostEstimate(
        flops=int(n_groups * (2 * G * G * F + 2 * (nit_max + n_big) * G * G * G)),
        transcendentals=0,
        bytes_accessed=int(n_groups * (G * F * 4 + 3 * G * 4 + G * 4 + 12)))

    grid_spec = pltpu.PrefetchScalarGridSpec(
        num_scalar_prefetch=1,
        grid=(n_groups,),
        in_specs=[pl.BlockSpec((1, G, F), lambda g, _m: (g, 0, 0)),
                  pl.BlockSpec((1, 1, G), lambda g, _m: (g, 0, 0)),
                  pl.BlockSpec((1, G, 1), lambda g, _m: (g, 0, 0))],
        out_specs=pl.BlockSpec((1, 1, G), lambda g, _m: (g, 0, 0)),
        scratch_shapes=scratch)

    labels_grouped = pl.pallas_call(
        kernel,
        out_shape=jax.ShapeDtypeStruct((n_groups, 1, G), jnp.int32),
        grid_spec=grid_spec,
        compiler_params=pltpu.CompilerParams(
            dimension_semantics=("parallel",),   # groups shard across TCs on v7x
            vmem_limit_bytes=vmem_limit),
        cost_estimate=cost,
    )(jnp.asarray(meta), jnp.asarray(x), jnp.asarray(thr), jnp.asarray(gidx))

    lab_np = np.asarray(jax.block_until_ready(labels_grouped))
    for gi, (sel, *_rest) in enumerate(groups):
        labels_out[sel] = lab_np[gi, 0, :len(sel)]
    return jnp.asarray(labels_out)


def clusters_from_labels(labels):
    """Recover the module's list-of-clusters output from dense labels."""
    labels = np.asarray(labels)
    return [np.where(labels == u)[0] for u in np.unique(labels) if u >= 0]


def _numpy_reference(data_np, cluster_classes, eps, min_samples, min_size,
                     num_classes):
    """Pure-numpy DBSCAN (min_samples == 1 => connected components) reference."""
    n = data_np.shape[0]
    labels = np.full(n, -1, dtype=np.int32)
    seg = data_np[:, -1]
    for b in np.unique(data_np[:, 0].astype(int)):
        bmask = data_np[:, 0] == b
        for k, c in enumerate(cluster_classes):
            assert min_samples[k] == 1
            sel = np.where(bmask & (seg == c))[0]
            if len(sel) == 0:
                continue
            v = data_np[sel, 1:4]
            d2 = ((v[:, None, :] - v[None, :, :]) ** 2).sum(-1)
            adj = d2 <= eps[k] ** 2
            lab = np.arange(len(sel))
            while True:
                new = np.array([lab[adj[i]].min() for i in range(len(sel))])
                if np.array_equal(new, lab):
                    break
                lab = new
            for u in np.unique(lab):
                idx = sel[lab == u]
                if len(idx) >= min_size[k]:
                    labels[idx] = idx.min()
    return labels


if __name__ == "__main__":
    key = jax.random.PRNGKey(0)
    kb, kc, ks = jax.random.split(key, 3)
    N, B, C = 200, 2, 4
    bid = jax.random.randint(kb, (N, 1), 0, B).astype(jnp.float32)
    coords = jax.random.randint(kc, (N, 3), 0, 16).astype(jnp.float32)
    seg = jax.random.randint(ks, (N, 1), 0, C).astype(jnp.float32)
    # layout: (N, 5) = [batch_id, x, y, z, sem_type]
    data = jnp.concatenate([bid, coords, seg], axis=1)

    cluster_classes = [0, 1, 2, 3]
    eps, min_samples, min_size = 1.999, 1, 3

    labels = dbscan_fragmenter(data, cluster_classes=cluster_classes, eps=eps,
                               min_samples=min_samples, min_size=min_size,
                               num_classes=C)
    labels = np.asarray(jax.block_until_ready(labels))

    ref = _numpy_reference(np.asarray(data), cluster_classes,
                           [eps] * C, [min_samples] * C, [min_size] * C, C)
    assert np.array_equal(labels, ref), "Pallas DBSCAN mismatch vs numpy reference"

    clusts = clusters_from_labels(labels)  # same cluster index sets as torch module
    print("KERNEL_OK")
</pallas_src>

<mosaic_0001>
module attributes {stable_mosaic.version = 11 : i64} {
  func.func @_dbscan_kernel_ms1(%arg0: i32, %arg1: memref<8x3xi32, #tpu.memory_space<smem>>, %arg2: memref<1x128x8xf32, #tpu.memory_space<vmem>>, %arg3: memref<1x1x128xf32, #tpu.memory_space<vmem>>, %arg4: memref<1x128x1xf32, #tpu.memory_space<vmem>>, %arg5: memref<1x1x128xi32, #tpu.memory_space<vmem>>, %arg6: memref<128x128xbf16, #tpu.memory_space<vmem>>) attributes {dimension_semantics = [#tpu.dimension_semantics<parallel>], iteration_bounds = array<i64: 8>, scalar_prefetch = 1 : i64, scratch_operands = 1 : i64, tpu.core_type = #tpu.core_type<tc>, window_params = [{transform_indices = @transform_0, window_bounds = array<i64: 1, 128, 8>}, {transform_indices = @transform_1, window_bounds = array<i64: 1, 1, 128>}, {transform_indices = @transform_2, window_bounds = array<i64: 1, 128, 1>}, {transform_indices = @transform_3, window_bounds = array<i64: 1, 1, 128>}]} {
    %c0 = arith.constant 0 : index
    %c0_0 = arith.constant 0 : index
    %c0_1 = arith.constant 0 : index
    %0 = vector.load %arg2[%c0, %c0_0, %c0_1] : memref<1x128x8xf32, #tpu.memory_space<vmem>>, vector<1x128x8xf32>
    %1 = vector.shape_cast %0 : vector<1x128x8xf32> to vector<128x8xf32>
    %c0_2 = arith.constant 0 : index
    %c0_3 = arith.constant 0 : index
    %c0_4 = arith.constant 0 : index
    %2 = vector.load %arg3[%c0_2, %c0_3, %c0_4] : memref<1x1x128xf32, #tpu.memory_space<vmem>>, vector<1x1x128xf32>
    %3 = vector.shape_cast %2 : vector<1x1x128xf32> to vector<1x128xf32>
    %c0_5 = arith.constant 0 : index
    %c0_6 = arith.constant 0 : index
    %c0_7 = arith.constant 0 : index
    %4 = vector.load %arg4[%c0_5, %c0_6, %c0_7] : memref<1x128x1xf32, #tpu.memory_space<vmem>>, vector<1x128x1xf32>
    %5 = vector.shape_cast %4 : vector<1x128x1xf32> to vector<128x1xf32>
    %cst = arith.constant 1.000000e+09 : f32
    %6 = vector.broadcast %cst : f32 to vector<128x1xf32>
    %7 = arith.cmpf olt, %5, %6 : vector<128x1xf32>
    %cst_8 = arith.constant dense<0.000000e+00> : vector<128x128xf32>
    %8 = tpu.matmul %1, %1, %cst_8 {dimension_numbers = #tpu.dot_dimension_numbers<[1], [1], [0], [0], [0, 0, 1, 0], [], []>} : vector<128x8xf32>, vector<128x8xf32>, vector<128x128xf32> -> vector<128x128xf32>
    %9 = arith.mulf %1, %1 : vector<128x8xf32>
    %cst_9 = arith.constant dense<0.000000e+00> : vector<128xf32>
    %10 = vector.multi_reduction <add>, %9, %cst_9 [1] : vector<128x8xf32> to vector<128xf32>
    %11 = vector.shape_cast %10 : vector<128xf32> to vector<128x1xf32>
    %cst_10 = arith.constant 2.000000e+00 : f32
    %12 = vector.broadcast %cst_10 : f32 to vector<128x128xf32>
    %13 = arith.mulf %12, %8 : vector<128x128xf32>
    %14 = vector.broadcast %11 : vector<128x1xf32> to vector<128x128xf32>
    %15 = arith.subf %14, %13 : vector<128x128xf32>
    %16 = vector.broadcast %3 : vector<1x128xf32> to vector<128x128xf32>
    %17 = arith.cmpf ole, %15, %16 : vector<128x128xf32>
    %18 = vector.broadcast %7 : vector<128x1xi1> to vector<128x128xi1>
    %19 = arith.andi %18, %17 : vector<128x128xi1>
    %20 = arith.extui %19 : vector<128x128xi1> to vector<128x128xi32>
    %21 = arith.sitofp %20 : vector<128x128xi32> to vector<128x128xf32>
    %22 = arith.truncf %21 : vector<128x128xf32> to vector<128x128xbf16>
    %c0_11 = arith.constant 0 : index
    %c0_12 = arith.constant 0 : index
    %23 = vector.load %arg6[%c0_11, %c0_12] : memref<128x128xbf16, #tpu.memory_space<vmem>>, vector<128x128xbf16>
    tpu.vector_store %arg6[%c0_11, %c0_12], %22 {strides = array<i32>} : memref<128x128xbf16, #tpu.memory_space<vmem>>, vector<128x128xbf16>,
    %24 = arith.index_cast %arg0 : i32 to index
    %c2 = arith.constant 2 : index
    %25 = memref.load %arg1[%24, %c2] : memref<8x3xi32, #tpu.memory_space<smem>>
    %c1_i32 = arith.constant 1 : i32
    %26 = arith.subi %25, %c1_i32 : i32
    %c0_i32 = arith.constant 0 : i32
    %c0_i32_13 = arith.constant 0 : i32
    %27 = arith.subi %26, %c0_i32_13 : i32
    %28 = arith.addi %c0_i32_13, %27 : i32
    %c1_i32_14 = arith.constant 1 : i32
    scf.for %arg7 = %c0_i32_13 to %28 step %c1_i32_14  : i32 {
      %c0_28 = arith.constant 0 : index
      %c0_29 = arith.constant 0 : index
      %56 = vector.load %arg6[%c0_28, %c0_29] : memref<128x128xbf16, #tpu.memory_space<vmem>>, vector<128x128xbf16>
      %cst_30 = arith.constant dense<0.000000e+00> : vector<128x128xf32>
      %57 = tpu.matmul %56, %56, %cst_30 {dimension_numbers = #tpu.dot_dimension_numbers<[1], [0], [0], [1], [0, 0, 1, 1], [], []>} : vector<128x128xbf16>, vector<128x128xbf16>, vector<128x128xf32> -> vector<128x128xf32>
      %cst_31 = arith.constant 0.000000e+00 : f32
      %58 = vector.broadcast %cst_31 : f32 to vector<128x128xf32>
      %59 = arith.cmpf ogt, %57, %58 : vector<128x128xf32>
      %60 = arith.extui %59 : vector<128x128xi1> to vector<128x128xi32>
      %61 = arith.sitofp %60 : vector<128x128xi32> to vector<128x128xf32>
      %62 = arith.truncf %61 : vector<128x128xf32> to vector<128x128xbf16>
      %c0_32 = arith.constant 0 : index
      %c0_33 = arith.constant 0 : index
      %63 = vector.load %arg6[%c0_32, %c0_33] : memref<128x128xbf16, #tpu.memory_space<vmem>>, vector<128x128xbf16>
      tpu.vector_store %arg6[%c0_32, %c0_33], %62 {strides = array<i32>} : memref<128x128xbf16, #tpu.memory_space<vmem>>, vector<128x128xbf16>,
    }
    %c0_15 = arith.constant 0 : index
    %c0_16 = arith.constant 0 : index
    %29 = vector.load %arg6[%c0_15, %c0_16] : memref<128x128xbf16, #tpu.memory_space<vmem>>, vector<128x128xbf16>
    %cst_17 = arith.constant dense<0.000000e+00> : vector<128x128xf32>
    %30 = tpu.matmul %29, %29, %cst_17 {dimension_numbers = #tpu.dot_dimension_numbers<[1], [0], [0], [1], [0, 0, 1, 1], [], []>} : vector<128x128xbf16>, vector<128x128xbf16>, vector<128x128xf32> -> vector<128x128xf32>
    %cst_18 = arith.constant 0.000000e+00 : f32
    %31 = vector.broadcast %cst_18 : f32 to vector<128x128xf32>
    %32 = arith.cmpf ogt, %30, %31 : vector<128x128xf32>
    %cst_19 = arith.constant 1.000000e+09 : f32
    %33 = vector.shape_cast %5 : vector<128x1xf32> to vector<128x1xf32>
    %34 = vector.broadcast %33 : vector<128x1xf32> to vector<128x128xf32>
    %35 = vector.broadcast %cst_19 : f32 to vector<128x128xf32>
    %36 = arith.select %32, %34, %35 : vector<128x128xi1>, vector<128x128xf32>
    %cst_20 = arith.constant dense<0x7F800000> : vector<128xf32>
    %37 = vector.multi_reduction <minimumf>, %36, %cst_20 [0] : vector<128x128xf32> to vector<128xf32>
    %38 = vector.shape_cast %37 : vector<128xf32> to vector<1x128xf32>
    %39 = arith.extui %32 : vector<128x128xi1> to vector<128x128xi32>
    %40 = arith.sitofp %39 : vector<128x128xi32> to vector<128x128xf32>
    %cst_21 = arith.constant dense<0.000000e+00> : vector<128xf32>
    %41 = vector.multi_reduction <add>, %40, %cst_21 [0] : vector<128x128xf32> to vector<128xf32>
    %42 = vector.shape_cast %41 : vector<128xf32> to vector<1x128xf32>
    %43 = arith.index_cast %arg0 : i32 to index
    %c0_22 = arith.constant 0 : index
    %44 = memref.load %arg1[%43, %c0_22] : memref<8x3xi32, #tpu.memory_space<smem>>
    %45 = arith.sitofp %44 : i32 to f32
    %cst_23 = arith.constant 1.000000e+09 : f32
    %46 = vector.broadcast %cst_23 : f32 to vector<1x128xf32>
    %47 = arith.cmpf olt, %38, %46 : vector<1x128xf32>
    %48 = vector.broadcast %45 : f32 to vector<1x128xf32>
    %49 = arith.cmpf oge, %42, %48 : vector<1x128xf32>
    %50 = arith.andi %47, %49 : vector<1x128xi1>
    %cst_24 = arith.constant -1.000000e+00 : f32
    %51 = vector.broadcast %cst_24 : f32 to vector<1x128xf32>
    %52 = arith.select %50, %38, %51 : vector<1x128xi1>, vector<1x128xf32>
    %53 = arith.fptosi %52 : vector<1x128xf32> to vector<1x128xi32>
    %54 = vector.shape_cast %53 : vector<1x128xi32> to vector<1x1x128xi32>
    %c0_25 = arith.constant 0 : index
    %c0_26 = arith.constant 0 : index
    %c0_27 = arith.constant 0 : index
    %55 = vector.load %arg5[%c0_25, %c0_26, %c0_27] : memref<1x1x128xi32, #tpu.memory_space<vmem>>, vector<1x1x128xi32>
    tpu.vector_store %arg5[%c0_25, %c0_26, %c0_27], %54 {strides = array<i32>} : memref<1x1x128xi32, #tpu.memory_space<vmem>>, vector<1x1x128xi32>,
    return
  }
  func.func @transform_0(%arg0: i32, %arg1: memref<8x3xi32, #tpu.memory_space<smem>>) -> (i32, i32, i32) {
    %c0_i32 = arith.constant 0 : i32
    %c0_i32_0 = arith.constant 0 : i32
    %c0_i32_1 = arith.constant 0 : i32
    return %arg0, %c0_i32, %c0_i32_0 : i32, i32, i32
  }
  func.func @transform_1(%arg0: i32, %arg1: memref<8x3xi32, #tpu.memory_space<smem>>) -> (i32, i32, i32) {
    %c0_i32 = arith.constant 0 : i32
    %c0_i32_0 = arith.constant 0 : i32
    %c0_i32_1 = arith.constant 0 : i32
    return %arg0, %c0_i32, %c0_i32_0 : i32, i32, i32
  }
  func.func @transform_2(%arg0: i32, %arg1: memref<8x3xi32, #tpu.memory_space<smem>>) -> (i32, i32, i32) {
    %c0_i32 = arith.constant 0 : i32
    %c0_i32_0 = arith.constant 0 : i32
    %c0_i32_1 = arith.constant 0 : i32
    return %arg0, %c0_i32, %c0_i32_0 : i32, i32, i32
  }
  func.func @transform_3(%arg0: i32, %arg1: memref<8x3xi32, #tpu.memory_space<smem>>) -> (i32, i32, i32) {
    %c0_i32 = arith.constant 0 : i32
    %c0_i32_0 = arith.constant 0 : i32
    %c0_i32_1 = arith.constant 0 : i32
    return %arg0, %c0_i32, %c0_i32_0 : i32, i32, i32
  }
}

</mosaic_0001>

<bundles_post_ra>
// kernel: tpu_custom_call.1
= control target key start
LH: loop header
LB: loop body
LE: loop exit
PB: predicated region body
PF: predicated region fallthrough
CT: control target
= control target key end

     0   :  { %s2501_s0 = inlined_call_operand.vmem [shape: s32[8,3], index: 0, kind: input, shape index: {}]   ;;  %s2502_s1 = inlined_call_operand.vmem [shape: f32[8,128,8], index: 1, kind: input, shape index: {}]   ;;  %s2503_s2 = inlined_call_operand.vmem [shape: f32[8,1,128], index: 2, kind: input, shape index: {}]   ;;  %s2504_s3 = inlined_call_operand.vmem [shape: f32[8,128,1], index: 3, kind: input, shape index: {}]   ;;  %s2505_s4 = inlined_call_operand.hbm [shape: s32[8,1,128], index: 4, kind: output, shape index: {}]  }
   0x1   :  { %s9_s17 = sshll.u32 %s2501_s0, 4  ;;  %s10_s17 = int_to_ptr.vmem [resolvable:$true] %s9_s17 }
   0x2   :  { %s1722_s18 = scalar_lea.vmem %s10_s17, 128  ;;  %p1727_p1 = scmp.lt.s32.totalorder %s10_s17, %s10_s17 }
   0x3   :  { %p1723_p0 = scmp.ne.s32.totalorder %s10_s17, %s1722_s18  ;;  %p1728_p2 = scmp.lt.s32.totalorder %s1722_s18, %s1722_s18 }
   0x5   :  { %p1729_p3 = por %p1728_p2, %p1727_p1 }
   0x7   :  { %p1730_p4 = pnand %p1729_p3, %p1723_p0 }
   0x9   :  { %1733 = shalt.err (!%p1730_p4)  }
   0xa   :  { %s1808_s19 = smov [#allocation4]  }
   0xb   :  { %12 = dma.vmem_to_smem %s10_s17, 128, %s1808_s19, [#allocation3] }
   0xc   :  { %1782 = dma.done.wait [#allocation3], 128 }
   0xd   :  { %1783 = vsyncadd [#allocation3], 4294967168 }
   0xe   :  { %14 = sfence }
   0xf   :  { %15 = vsyncpa [#allocation6], 0 }
  0x10   :  { %17 = vsyncpa [#allocation6 + $0x1], 0  ;;  %s1841_s20 = smov 0   ;;  %s1843_s21 = smov 0  }
  0x11   :  { %s1845_s0 = smov 0   ;;  %s1847_s22 = smov 0  }
  0x12 LB: > { %s1862_s23 = sadd.s32 4294967295, %s1802_s22   ;;  %s1288_s24 = sadd.s32 4294967294, %s1802_s22   ;;  %s1802_s22 = sphi %s1847_s22, %s2517_s22   ;;  %s1798_s0 = sphi %s1845_s0, %s2516_s0   ;;  %s1794_s21 = sphi %s1843_s21, %s2515_s21   ;;  %s1790_s20 = sphi %s1841_s20, %s2514_s20  }
  0x13   : > { %s1866_s25 = sadd.s32 1, %s1802_s22   ;;  %s108_s26 = sadd.s32 1, %s1798_s0 }
  0x14   : > { %s105_s27 = ssub.s32 %s1802_s22, %s1866_s25  ;;  %p118_p5 = scmp.ne.s32.totalorder %s1798_s0, %s1794_s21 }
  0x15   : > { %p106_p6 = scmp.eq.s32.totalorder %s105_s27, 0  ;;  %p119_p7 = scmp.eq.s32.totalorder %s1862_s23, 7 }
  0x16   : > { %p124_p8 = scmp.ne.s32.totalorder %s1794_s21, %s1790_s20  ;;  %p125_p9 = scmp.eq.s32.totalorder %s1288_s24, 7 }
  0x17   : > { %s1877_s28 = scalar_select %p106_p6, %s1798_s0, %s108_s26  }
  0x18   : > { %p1879_p10 = por %p119_p7, %p118_p5  ;;  %p1883_p11 = por %p125_p9, %p124_p8 }
  0x19   : > { %p1291_p12 = scmp.ge.s32.totalorder %s1802_s22, 1  ;;  %p165_p13 = scmp.lt.s32.totalorder %s1802_s22, 9 }
  0x1b   : > { %p166_p0 = pnand %p1291_p12, %p165_p13 }
  0x1c   : > { %s194_s5 = sand.u32 (!%p166_p0), 1, %s1794_s21   ;;  %p196_p1 = scmp.lt.s32.totalorder (!%p166_p0), %s1862_s23, 7  ;;  %v1809_v0 = vmov (!%p166_p0), 0   ;;  %vm259_vm0 = vcmask (!%p166_p0), 64512  }
  0x1d   : > { %169 = sbr.rel (%p166_p0) target bundleno = 925 (0x39d), region = 32  ;;  %1719 = vset.pattern.permute.xlu1 (!%p166_p0), %v1809_v0  ;;  %1718 = vset.pattern.permute.xlu0 (!%p166_p0), %v1809_v0  ;;  %vm1906_vm1 = vmpackc.low (!%p166_p0), %vm259_vm0, %vm259_vm0  ;;  %s1345_s14 = sshll.u32 (!%p166_p0), %s1862_s23, 7 }
  0x1e   : > { %s716_s15 = sadd.s32 (!%p166_p0), 2, %s1345_s14  ;;  %s2329_s26 = scalar_lea.vmem (!%p166_p0), [#allocation5], %s194_s5 }
  0x1f   : > { %s2196_s16 = sld [smem:[#allocation4 + %s716_s15]] (!%p166_p0) }
  0x24   : > { %s1894_s6 = scalar_select %p196_p1, %s1862_s23, 7 }
  0x25   : > { %s1346_s17 = sadd.s32 4294967295, %s2196_s16 }
  0x26   : > { %s1383_s7 = sshll.u32 %s1894_s6, 7  ;;  %s203_s24 = scalar_lea.vmem %s2503_s2, %s1894_s6 }
  0x27   : > { %s1902_s10 = scalar_lea.vmem %s2502_s1, %s1383_s7  ;;  %s2059_s13 = scalar_lea.vmem %s2504_s3, %s1383_s7 }
  0x28   : > { %v210_v2 = vld [vmem:[%s1902_s10] sm:$0xff]  ;;  %v1912_v3 = vld [vmem:[%s1902_s10 + $0x8] sm:$0xff]  ;;  %v1915_v4 = vld [vmem:[%s1902_s10 + $0x10] sm:$0xff]  ;;  %p1347_p2 = scmp.le.s32.totalorder %s1346_s17, 0 }
  0x29   : > { %v1569_v5 = vpack.c.bf16 %v1912_v3, %v210_v2  ;;  %v1919_v6 = vld [vmem:[%s1902_s10 + $0x18] sm:$0xff]  ;;  %v455_v7 = vmul.f32 %v1915_v4, %v1915_v4  ;;  %1481 = vmatprep.mubr.msk.f32.mxu0 %vm259_vm0, %v210_v2  ;;  %v453_v8 = vmul.f32 %v210_v2, %v210_v2  ;;  %v454_v13 = vmul.f32 %v1912_v3, %v1912_v3  ;;  %v218_v14 = vld [vmem:[%s1902_s10 + $0x40] sm:$0xff]  ;;  %v1949_v16 = vld [vmem:[%s1902_s10 + $0x28] sm:$0xff]  ;;  %s2333_s27 = smov (!%p1347_p2), 0  }
  0x2a   : > { %v1575_v9 = vpack.c.bf16 %v1919_v6, %v1915_v4  ;;  %v456_v11 = vmul.f32 %v1919_v6, %v1919_v6  ;;  %v1946_v15 = vld [vmem:[%s1902_s10 + $0x20] sm:$0xff]  ;;  %1493 = vmatprep.mubr.msk.f32.mxu1 %vm259_vm0, %v218_v14  ;;  %v458_v18 = vmul.f32 %v1949_v16, %v1949_v16  ;;  %v1961_v22 = vld [vmem:[%s1902_s10 + $0x38] sm:$0xff]  ;;  %v1964_v23 = vld [vmem:[%s1902_s10 + $0x30] sm:$0xff]  ;;  %v461_v32 = vmul.f32 %v218_v14, %v218_v14 }
  0x2b   : > { %1571 = vmatprep.subr.msk.bf16.mxu0 %vm1906_vm1, %v1569_v5  ;;  %1617 = vmatprep.subr.msk.bf16.mxu1 %vm1906_vm1, %v1569_v5  ;;  %v475_v10 = vsel %vm259_vm0, %v455_v7, 0.0  ;;  %v469_v12 = vsel %vm259_vm0, %v453_v8, 0.0  ;;  %v472_v19 = vsel %vm259_vm0, %v454_v13, 0.0  ;;  %v457_v20 = vmul.f32 %v1946_v15, %v1946_v15  ;;  %v1981_v28 = vld [vmem:[%s1902_s10 + $0x48] sm:$0xff]  ;;  %v1990_v34 = vld [vmem:[%s1902_s10 + $0x58] sm:$0xff]  ;;  %v1993_v35 = vld [vmem:[%s1902_s10 + $0x50] sm:$0xff] }
  0x2c   : > { %1574 = vmatpush3.bf16.xpose.msk.msra.mxu0 %vm1906_vm1, %v1569_v5  ;;  %1625 = vmatpush3.bf16.xpose.msk.msra.mxu1 %vm1906_vm1, %v1569_v5  ;;  %v478_v17 = vsel %vm259_vm0, %v456_v11, 0.0  ;;  %v1581_v21 = vpack.c.bf16 %v1949_v16, %v1946_v15  ;;  %v484_v24 = vsel %vm259_vm0, %v458_v18, 0.0  ;;  %v460_v25 = vmul.f32 %v1961_v22, %v1961_v22  ;;  %v2010_v40 = vld [vmem:[%s1902_s10 + $0x68] sm:$0xff]  ;;  %v2013_v41 = vld [vmem:[%s1902_s10 + $0x60] sm:$0xff]  ;;  %v2023_v47 = vld [vmem:[%s1902_s10 + $0x78] sm:$0xff] }
  0x2d   : > { %1577 = vmatprep.subr.msk.bf16.mxu0 %vm1906_vm1, %v1575_v9  ;;  %1618 = vmatprep.subr.msk.bf16.mxu1 %vm1906_vm1, %v1575_v9  ;;  %v481_v26 = vsel %vm259_vm0, %v457_v20, 0.0  ;;  %v459_v27 = vmul.f32 %v1964_v23, %v1964_v23  ;;  %v462_v30 = vmul.f32 %v1981_v28, %v1981_v28  ;;  %v1587_v33 = vpack.c.bf16 %v1961_v22, %v1964_v23  ;;  %v2026_v48 = vld [vmem:[%s1902_s10 + $0x70] sm:$0xff]  ;;  %v2064_v57 = vld [vmem:[%s2059_s13 + $0x8] sm:$0xff]  ;;  %v2080_v60 = vld [vmem:[%s2059_s13] sm:$0xff] }
  0x2e   : > { %476 = vadd.xlane.f32.xlu1 %v475_v10  ;;  %470 = vadd.xlane.f32.xlu0 %v469_v12  ;;  %v490_v29 = vsel %vm259_vm0, %v460_v25, 0.0  ;;  %v464_v37 = vmul.f32 %v1990_v34, %v1990_v34  ;;  %v493_v38 = vsel %vm259_vm0, %v461_v32, 0.0  ;;  %v463_v39 = vmul.f32 %v1993_v35, %v1993_v35  ;;  %v2076_v58 = vld [vmem:[%s2059_s13 + $0x10] sm:$0xff]  ;;  %v2086_v62 = vld [vmem:[%s2059_s13 + $0x18] sm:$0xff]  ;;  %v2095_v2 = vld [vmem:[%s2059_s13 + $0x48] sm:$0xff] }
  0x2f   : > { %v487_v31 = vsel %vm259_vm0, %v459_v27, 0.0  ;;  %v496_v36 = vsel %vm259_vm0, %v462_v30, 0.0  ;;  %v466_v43 = vmul.f32 %v2010_v40, %v2010_v40  ;;  %v465_v45 = vmul.f32 %v2013_v41, %v2013_v41  ;;  %v2103_v5 = vld [vmem:[%s2059_s13 + $0x20] sm:$0xff]  ;;  %v2120_v12 = vld [vmem:[%s2059_s13 + $0x28] sm:$0xff]  ;;  %v2132_v18 = vld [vmem:[%s2059_s13 + $0x78] sm:$0xff] }
  0x30   : > { %v502_v42 = vsel %vm259_vm0, %v464_v37, 0.0  ;;  %v499_v44 = vsel %vm259_vm0, %v463_v39, 0.0  ;;  %v1593_v46 = vpack.c.bf16 %v1981_v28, %v218_v14  ;;  %v468_v50 = vmul.f32 %v2023_v47, %v2023_v47  ;;  %v2123_v13 = vld [vmem:[%s2059_s13 + $0x68] sm:$0xff]  ;;  %v2147_v20 = vld [vmem:[%s2059_s13 + $0x38] sm:$0xff]  ;;  %v2188_v25 = vld [vmem:[%s2059_s13 + $0x70] sm:$0xff] }
  0x31   : > { %v508_v49 = vsel %vm259_vm0, %v466_v43, 0.0  ;;  %v505_v51 = vsel %vm259_vm0, %v465_v45, 0.0  ;;  %v467_v52 = vmul.f32 %v2026_v48, %v2026_v48  ;;  %v1599_v55 = vpack.c.bf16 %v1990_v34, %v1993_v35 }
  0x32   : > { %479 = vadd.xlane.f32.xlu1 %v478_v17  ;;  %473 = vadd.xlane.f32.xlu0 %v472_v19  ;;  %v514_v53 = vsel %vm259_vm0, %v468_v50, 0.0  ;;  %v1605_v56 = vpack.c.bf16 %v2010_v40, %v2013_v41  ;;  %vm244_vm2 = vcmp.lt.f32.partialorder %v2064_v57, 1e+09  ;;  %v1611_v61 = vpack.c.bf16 %v2023_v47, %v2026_v48  ;;  %v2129_v17 = vld [vmem:[%s2059_s13 + $0x30] sm:$0xff] }
  0x33   : > { %v511_v54 = vsel %vm259_vm0, %v467_v52, 0.0  ;;  %v572_v59 = vsel %vm244_vm2, 1, %v1809_v0  ;;  %vm245_vm3 = vcmp.lt.f32.partialorder %v2076_v58, 1e+09  ;;  %vm243_vm4 = vcmp.lt.f32.partialorder %v2080_v60, 1e+09 }
  0x34   : > { %1580 = vmatpush3.bf16.xpose.msk.msra.mxu0 %vm1906_vm1, %v1575_v9  ;;  %1626 = vmatpush3.bf16.xpose.msk.msra.mxu1 %vm1906_vm1, %v1575_v9  ;;  %v573_v63 = vsel %vm245_vm3, 1, %v1809_v0  ;;  %vm246_vm5 = vcmp.lt.f32.partialorder %v2086_v62, 1e+09  ;;  %v571_v7 = vsel %vm243_vm4, 1, %v1809_v0  ;;  %vm252_vm6 = vcmp.lt.f32.partialorder %v2095_v2, 1e+09 }
  0x35   : > { %1583 = vmatprep.subr.msk.bf16.mxu0 %vm1906_vm1, %v1581_v21  ;;  %1619 = vmatprep.subr.msk.bf16.mxu1 %vm1906_vm1, %v1581_v21  ;;  %v574_v8 = vsel %vm246_vm5, 1, %v1809_v0  ;;  %v2109_v9 = vld [vmem:[%s2059_s13 + $0x58] sm:$0xff]  ;;  %vm247_vm7 = vcmp.lt.f32.partialorder %v2103_v5, 1e+09  ;;  %v580_v10 = vsel %vm252_vm6, 1, %v1809_v0 }
  0x36   : > { %485 = vadd.xlane.f32.xlu1 %v484_v24  ;;  %482 = vadd.xlane.f32.xlu0 %v481_v26  ;;  %vm254_vm8 = vcmp.lt.f32.partialorder %v2109_v9, 1e+09  ;;  %v575_v11 = vsel %vm247_vm7, 1, %v1809_v0  ;;  %vm248_vm9 = vcmp.lt.f32.partialorder %v2120_v12, 1e+09 }
  0x37   : > { %v582_v14 = vsel %vm254_vm8, 1, %v1809_v0  ;;  %vm256_vm10 = vcmp.lt.f32.partialorder %v2123_v13, 1e+09  ;;  %v576_v1 = vsel %vm248_vm9, 1, %v1809_v0  ;;  %vm249_vm11 = vcmp.lt.f32.partialorder %v2129_v17, 1e+09 }
  0x38   : > { %v584_v19 = vsel %vm256_vm10, 1, %v1809_v0  ;;  %vm258_vm12 = vcmp.lt.f32.partialorder %v2132_v18, 1e+09  ;;  %vm250_vm13 = vcmp.lt.f32.partialorder %v2147_v20, 1e+09 }
  0x39   : > { %v578_v24 = vsel %vm250_vm13, 1, %v1809_v0  ;;  %vm257_vm2 = vcmp.lt.f32.partialorder %v2188_v25, 1e+09 }
  0x3a   : > { %491 = vadd.xlane.f32.xlu1 %v490_v29  ;;  %488 = vadd.xlane.f32.xlu0 %v487_v31 }
  0x3c   : > { %1586 = vmatpush3.bf16.xpose.msk.msra.mxu0 %vm1906_vm1, %v1581_v21  ;;  %1627 = vmatpush3.bf16.xpose.msk.msra.mxu1 %vm1906_vm1, %v1581_v21  ;;  %v586_v21 = vsel %vm258_vm12, 1, %v1809_v0 }
  0x3d   : > { %1589 = vmatprep.subr.msk.bf16.mxu0 %vm1906_vm1, %v1587_v33  ;;  %1620 = vmatprep.subr.msk.bf16.mxu1 %vm1906_vm1, %v1587_v33 }
  0x3e   : > { %497 = vadd.xlane.f32.xlu1 %v496_v36  ;;  %494 = vadd.xlane.f32.xlu0 %v493_v38 }
  0x42   : > { %503 = vadd.xlane.f32.xlu1 %v502_v42  ;;  %500 = vadd.xlane.f32.xlu0 %v499_v44 }
  0x44   : > { %1592 = vmatpush3.bf16.xpose.msk.msra.mxu0 %vm1906_vm1, %v1587_v33  ;;  %1628 = vmatpush3.bf16.xpose.msk.msra.mxu1 %vm1906_vm1, %v1587_v33 }
  0x45   : > { %1595 = vmatprep.subr.msk.bf16.mxu0 %vm1906_vm1, %v1593_v46  ;;  %1621 = vmatprep.subr.msk.bf16.mxu1 %vm1906_vm1, %v1593_v46 }
  0x46   : > { %509 = vadd.xlane.f32.xlu1 %v508_v49  ;;  %506 = vadd.xlane.f32.xlu0 %v505_v51 }
  0x4a   : > { %515 = vadd.xlane.f32.xlu1 %v514_v53  ;;  %512 = vadd.xlane.f32.xlu0 %v511_v54 }
  0x4c   : > { %1598 = vmatpush3.bf16.xpose.msk.msra.mxu0 %vm1906_vm1, %v1593_v46  ;;  %1629 = vmatpush3.bf16.xpose.msk.msra.mxu1 %vm1906_vm1, %v1593_v46 }
  0x4d   : > { %1601 = vmatprep.subr.msk.bf16.mxu0 %vm1906_vm1, %v1599_v55  ;;  %1622 = vmatprep.subr.msk.bf16.mxu1 %vm1906_vm1, %v1599_v55 }
  0x54   : > { %1604 = vmatpush3.bf16.xpose.msk.msra.mxu0 %vm1906_vm1, %v1599_v55  ;;  %1630 = vmatpush3.bf16.xpose.msk.msra.mxu1 %vm1906_vm1, %v1599_v55 }
  0x55   : > { %1607 = vmatprep.subr.msk.bf16.mxu0 %vm1906_vm1, %v1605_v56  ;;  %1623 = vmatprep.subr.msk.bf16.mxu1 %vm1906_vm1, %v1605_v56 }
  0x5b   : > { %591 = vperm.xlu1 %1719, %v572_v59  }
  0x5c   : > { %1610 = vmatpush3.bf16.xpose.msk.msra.mxu0 %vm1906_vm1, %v1605_v56  ;;  %1631 = vmatpush3.bf16.xpose.msk.msra.mxu1 %vm1906_vm1, %v1605_v56 }
  0x5d   : > { %1613 = vmatprep.subr.msk.bf16.mxu0 %vm1906_vm1, %v1611_v61  ;;  %1624 = vmatprep.subr.msk.bf16.mxu1 %vm1906_vm1, %v1611_v61 }
  0x5f   : > { %594 = vperm.xlu1 %1719, %v573_v63  }
  0x60   : > { %588 = vperm.xlu0 %1718, %v571_v7   ;;  %v2241_v7 = vld [vmem:[%s203_s24] ss:$0 sm:$0xff] }
  0x63   : > { %597 = vperm.xlu1 %1719, %v574_v8  }
  0x64   : > { %1616 = vmatpush3.bf16.xpose.msk.msra.mxu0 %vm1906_vm1, %v1611_v61  ;;  %1632 = vmatpush3.bf16.xpose.msk.msra.mxu1 %vm1906_vm1, %v1611_v61 }
  0x65   : > { %615 = vperm.xlu0 %1718, %v580_v10  }
  0x67   : > { %600 = vperm.xlu1 %1719, %v575_v11  }
  0x69   : > { %621 = vperm.xlu0 %1718, %v582_v14  }
  0x6b   : > { %1482 = vmatmul.mubr.msk.f32.vlgmr.msra.gmra.mrb[0].mxu0 %vm259_vm0, %v1912_v3  ;;  %1494 = vmatmul.mubr.msk.f32.vlgmr.msra.gmra.mrb[0].mxu1 %vm259_vm0, %v1981_v28  ;;  %v577_v3 = vsel %vm249_vm11, 1, %v1809_v0 }
  0x6c   : > { %1484 = vmatprep.mubr.msk.f32.mxu0 %vm259_vm0, %v1915_v4  ;;  %1496 = vmatprep.mubr.msk.f32.mxu1 %vm259_vm0, %v1993_v35  ;;  %v2161_v4 = vld [vmem:[%s2059_s13 + $0x40] sm:$0xff] }
  0x6d   : > { %603 = vperm.xlu1 %1719, %v576_v1   ;;  %627 = vperm.xlu0 %1718, %v584_v19   ;;  %vm251_vm14 = vcmp.lt.f32.partialorder %v2161_v4, 1e+09 }
  0x6f   : > { %1485 = vmatmul.mubr.msk.f32.gmra.mrb[2].mxu0 %vm259_vm0, %v1919_v6  ;;  %1497 = vmatmul.mubr.msk.f32.gmra.mrb[2].mxu1 %vm259_vm0, %v1990_v34  ;;  %v2174_v6 = vld [vmem:[%s2059_s13 + $0x50] sm:$0xff] }
  0x70   : > { %1487 = vmatprep.mubr.msk.f32.mxu0 %vm259_vm0, %v1946_v15  ;;  %1499 = vmatprep.mubr.msk.f32.mxu1 %vm259_vm0, %v2013_v41  ;;  %v579_v15 = vsel %vm251_vm14, 1, %v1809_v0  ;;  %vm253_vm15 = vcmp.lt.f32.partialorder %v2174_v6, 1e+09 }
  0x71   : > { %606 = vperm.xlu1 %1719, %v577_v3   ;;  %633 = vperm.xlu0 %1718, %v586_v21  }
  0x73   : > { %1488 = vmatmul.mubr.msk.f32.gmra.mrb[4].mxu0 %vm259_vm0, %v1949_v16  ;;  %1500 = vmatmul.mubr.msk.f32.gmra.mrb[4].mxu1 %vm259_vm0, %v2010_v40  ;;  %v2183_v16 = vld [vmem:[%s2059_s13 + $0x60] sm:$0xff] }
  0x74   : > { %1490 = vmatprep.mubr.msk.f32.mxu0 %vm259_vm0, %v1964_v23  ;;  %1502 = vmatprep.mubr.msk.f32.mxu1 %vm259_vm0, %v2026_v48  ;;  %v581_v23 = vsel %vm253_vm15, 1, %v1809_v0  ;;  %vm255_vm1 = vcmp.lt.f32.partialorder %v2183_v16, 1e+09 }
  0x75   : > { %609 = vperm.xlu1 %1719, %v578_v24   ;;  %v583_v26 = vsel %vm255_vm1, 1, %v1809_v0 }
  0x77   : > { %1491 = vmatmul.mubr.msk.f32.gmra.mrb[6].mxu0 %vm259_vm0, %v1961_v22  ;;  %1503 = vmatmul.mubr.msk.f32.gmra.mrb[6].mxu1 %vm259_vm0, %v2023_v47  ;;  %v585_v22 = vsel %vm257_vm2, 1, %v1809_v0 }
  0x79   : > { %612 = vperm.xlu1 %1719, %v579_v15  }
  0x7d   : > { %618 = vperm.xlu1 %1719, %v581_v23  }
  0x81   : > { %624 = vperm.xlu1 %1719, %v583_v26  }
  0x85   : > { %630 = vperm.xlu1 %1719, %v585_v22  }
  0xbb   : > { %v2199_v27 = vpop.xlane.xlu1 %476  ;;  %v471_v33 = vpop.xlane.xlu0 %470 }
  0xbf   : > { %v2201_v28 = vpop.xlane.xlu1 %479  ;;  %v474_v35 = vpop.xlane.xlu0 %473 }
  0xc3   : > { %v2203_v29 = vpop.xlane.xlu1 %485  ;;  %v2213_v37 = vpop.xlane.xlu0 %482 }
  0xc7   : > { %v2205_v30 = vpop.xlane.xlu1 %491  ;;  %v2215_v39 = vpop.xlane.xlu0 %488 }
  0xcb   : > { %v498_v31 = vpop.xlane.xlu1 %497  ;;  %v495_v41 = vpop.xlane.xlu0 %494 }
  0xcf   : > { %v2207_v32 = vpop.xlane.xlu1 %503  ;;  %v2221_v43 = vpop.xlane.xlu0 %500 }
  0xd3   : > { %v2209_v34 = vpop.xlane.xlu1 %509  ;;  %v2225_v45 = vpop.xlane.xlu0 %506 }
  0xd7   : > { %v2211_v36 = vpop.xlane.xlu1 %515  ;;  %v2229_v47 = vpop.xlane.xlu0 %512 }
  0xdb   : > { %v592_v38 = vpop.permute.xlu1 %591 }
  0xdc   : > { %vm636_vm0 = vcmp.eq.s32.totalorder %v592_v38, 1 }
  0xdf   : > { %v2217_v40 = vpop.permute.xlu1 %594  ;;  %v589_v49 = vpop.permute.xlu0 %588 }
  0xe0   : > { %vm637_vm3 = vcmp.eq.s32.totalorder %v2217_v40, 1  ;;  %vm635_vm5 = vcmp.eq.s32.totalorder %v589_v49, 1 }
  0xe3   : > { %v2219_v42 = vpop.permute.xlu1 %597 }
  0xe4   : > { %v616_v51 = vpop.permute.xlu0 %615  ;;  %vm638_vm4 = vcmp.eq.s32.totalorder %v2219_v42, 1 }
  0xe5   : > { %vm644_vm6 = vcmp.eq.s32.totalorder %v616_v51, 1 }
  0xe7   : > { %v2223_v44 = vpop.permute.xlu1 %600 }
  0xe8   : > { %v2235_v53 = vpop.permute.xlu0 %621  ;;  %vm639_vm1 = vcmp.eq.s32.totalorder %v2223_v44, 1 }
  0xe9   : > { %vm646_vm7 = vcmp.eq.s32.totalorder %v2235_v53, 1 }
  0xec   : > { %v2227_v46 = vpop.permute.xlu1 %603 }
  0xed   : > { %vm640_vm8 = vcmp.eq.s32.totalorder %v2227_v46, 1 }
  0xf0   : > { %v2231_v48 = vpop.permute.xlu1 %606 }
  0xf4   : > { %v2233_v50 = vpop.permute.xlu1 %609 }
  0xf8   : > { %v613_v52 = vpop.permute.xlu1 %612 }
  0xf9   : > { %vm643_vm2 = vcmp.eq.s32.totalorder %v613_v52, 1 }
  0xfc   : > { %v2245_v11 = vpop.permute.xlu1 %618 }
 0x13e   : > { %v1483_v54 = vpop.f32.mrb[0].mxu0  ;;  %v1495_v55 = vpop.f32.mrb[0].mxu1 }
 0x13f   : > { %v518_v56 = vmul.f32 2.0, %v1483_v54  ;;  %v526_v59 = vmul.f32 2.0, %v1495_v55  ;;  %v374_v61 = vpop.f32.mrb[1].mxu0  ;;  %v414_v63 = vpop.f32.mrb[1].mxu1 }
 0x140   : > { %v517_v8 = vmul.f32 2.0, %v374_v61  ;;  %v525_v10 = vmul.f32 2.0, %v414_v63  ;;  %v2251_v54 = vpop.permute.xlu0 %627 }
 0x141   : > { %v534_v14 = vsub.f32 %v474_v35, %v518_v56  ;;  %v542_v1 = vsub.f32 %v498_v31, %v526_v59  ;;  %vm648_vm14 = vcmp.eq.s32.totalorder %v2251_v54, 1 }
 0x142   : > { %v533_v19 = vsub.f32 %v471_v33, %v517_v8  ;;  %v541_v3 = vsub.f32 %v495_v41, %v525_v10  ;;  %v1486_v21 = vpop.f32.mrb[2].mxu0  ;;  %v1498_v24 = vpop.f32.mrb[2].mxu1  ;;  %v1810_v41 = vmov 0.0  }
 0x143   : > { %vm556_vm9 = vcmp.le.f32.partialorder %v534_v14, %v2241_v7  ;;  %vm564_vm10 = vcmp.le.f32.partialorder %v542_v1, %v2241_v7  ;;  %v520_v15 = vmul.f32 2.0, %v1486_v21  ;;  %v528_v23 = vmul.f32 2.0, %v1498_v24  ;;  %v384_v26 = vpop.f32.mrb[3].mxu0  ;;  %v424_v22 = vpop.f32.mrb[3].mxu1 }
 0x144   : > { %vm652_vm11 = vmand %vm636_vm0, %vm556_vm9  ;;  %vm555_vm12 = vcmp.le.f32.partialorder %v533_v19, %v2241_v7  ;;  %vm2256_vm13 = vcmp.le.f32.partialorder %v541_v3, %v2241_v7  ;;  %v519_v33 = vmul.f32 2.0, %v384_v26  ;;  %v527_v35 = vmul.f32 2.0, %v424_v22 }
 0x145   : > { %v1330_v55 = vsel %vm652_vm11, 1.0, %v1810_v41  ;;  %vm660_vm15 = vmand %vm644_vm6, %vm564_vm10  ;;  %v536_v56 = vsub.f32 %v2201_v28, %v520_v15  ;;  %v544_v38 = vsub.f32 %v2207_v32, %v528_v23 }
 0x146   : > { %v1338_v59 = vsel %vm660_vm15, 1.0, %v1810_v41  ;;  %vm651_vm0 = vmand %vm635_vm5, %vm555_vm12  ;;  %v535_v61 = vsub.f32 %v2199_v27, %v519_v33  ;;  %v543_v63 = vsub.f32 %v2221_v43, %v527_v35  ;;  %v1489_v8 = vpop.f32.mrb[4].mxu0  ;;  %v1501_v10 = vpop.f32.mrb[4].mxu1  ;;  %vm645_vm15 = vcmp.eq.s32.totalorder %v2245_v11, 1 }
 0x147   : > { %v1329_v51 = vsel %vm651_vm0, 1.0, %v1810_v41  ;;  %vm659_vm6 = vmand %vm643_vm2, %vm2256_vm13  ;;  %vm558_vm9 = vcmp.le.f32.partialorder %v536_v56, %v2241_v7  ;;  %vm566_vm10 = vcmp.le.f32.partialorder %v544_v38, %v2241_v7  ;;  %v522_v28 = vmul.f32 2.0, %v1489_v8  ;;  %v394_v32 = vpop.f32.mrb[5].mxu0  ;;  %v434_v52 = vpop.f32.mrb[5].mxu1 }
 0x148   : > { %v699_v49 = vpack.c.bf16 %v1330_v55, %v1329_v51  ;;  %v1337_v14 = vsel %vm659_vm6, 1.0, %v1810_v41  ;;  %vm654_vm5 = vmand %vm638_vm4, %vm558_vm9  ;;  %vm557_vm11 = vcmp.le.f32.partialorder %v535_v61, %v2241_v7  ;;  %vm2280_vm12 = vcmp.le.f32.partialorder %v543_v63, %v2241_v7  ;;  %v625_v43 = vpop.permute.xlu1 %624 }
 0x149   : > { %v703_v1 = vpack.c.bf16 %v1338_v59, %v1337_v14  ;;  %v1332_v19 = vsel %vm654_vm5, 1.0, %v1810_v41  ;;  %vm662_vm13 = vmand %vm646_vm7, %vm566_vm10  ;;  %v538_v3 = vsub.f32 %v2203_v29, %v522_v28  ;;  %v530_v21 = vmul.f32 2.0, %v1501_v10 }
 0x14a   : > { %707 = vst [vmem:[#allocation2] sm:$0xff] %v699_v49  ;;  %v1340_v42 = vsel %vm662_vm13, 1.0, %v1810_v41  ;;  %vm653_vm4 = vmand %vm637_vm3, %vm557_vm11  ;;  %v521_v24 = vmul.f32 2.0, %v394_v32  ;;  %v529_v15 = vmul.f32 2.0, %v434_v52  ;;  %v1492_v23 = vpop.f32.mrb[6].mxu0  ;;  %v1504_v26 = vpop.f32.mrb[6].mxu1 }
 0x14b   : > { %711 = vst [vmem:[#allocation2 + $0x20] sm:$0xff] %v703_v1  ;;  %v1331_v22 = vsel %vm653_vm4, 1.0, %v1810_v41  ;;  %vm661_vm7 = vmand %vm645_vm15, %vm2280_vm12  ;;  %vm560_vm2 = vcmp.le.f32.partialorder %v538_v3, %v2241_v7  ;;  %v546_v29 = vsub.f32 %v2209_v34, %v530_v21  ;;  %v524_v53 = vmul.f32 2.0, %v1492_v23  ;;  %v404_v11 = vpop.f32.mrb[7].mxu0  ;;  %v444_v31 = vpop.f32.mrb[7].mxu1 }
 0x14c   : > { %v700_v33 = vpack.c.bf16 %v1332_v19, %v1331_v22  ;;  %v1339_v40 = vsel %vm661_vm7, 1.0, %v1810_v41  ;;  %vm656_vm3 = vmand %vm640_vm8, %vm560_vm2  ;;  %v537_v35 = vsub.f32 %v2213_v37, %v521_v24  ;;  %v545_v55 = vsub.f32 %v2225_v45, %v529_v15  ;;  %v634_v37 = vpop.permute.xlu0 %633  ;;  %v631_v8 = vpop.permute.xlu1 %630 }
 0x14d   : > { %v704_v56 = vpack.c.bf16 %v1340_v42, %v1339_v40  ;;  %v1334_v38 = vsel %vm656_vm3, 1.0, %v1810_v41  ;;  %vm568_vm0 = vcmp.le.f32.partialorder %v546_v29, %v2241_v7  ;;  %v540_v34 = vsub.f32 %v2205_v30, %v524_v53 }
 0x14e   : > { %708 = vst [vmem:[#allocation2 + $0x8] sm:$0xff] %v700_v33  ;;  %vm664_vm6 = vmand %vm648_vm14, %vm568_vm0  ;;  %vm559_vm9 = vcmp.le.f32.partialorder %v537_v35, %v2241_v7  ;;  %vm567_vm10 = vcmp.le.f32.partialorder %v545_v55, %v2241_v7  ;;  %v532_v46 = vmul.f32 2.0, %v1504_v26  ;;  %v523_v59 = vmul.f32 2.0, %v404_v11 }
 0x14f   : > { %vm647_vm8 = vcmp.eq.s32.totalorder %v625_v43, 1  ;;  %712 = vst [vmem:[#allocation2 + $0x28] sm:$0xff] %v704_v56  ;;  %v1342_v45 = vsel %vm664_vm6, 1.0, %v1810_v41  ;;  %vm655_vm5 = vmand %vm639_vm1, %vm559_vm9  ;;  %vm562_vm11 = vcmp.le.f32.partialorder %v540_v34, %v2241_v7  ;;  %v531_v30 = vmul.f32 2.0, %v444_v31 }
 0x150   : > { %vm642_vm12 = vcmp.eq.s32.totalorder %v2233_v50, 1  ;;  %v1333_v54 = vsel %vm655_vm5, 1.0, %v1810_v41  ;;  %vm663_vm14 = vmand %vm647_vm8, %vm567_vm10  ;;  %v548_v61 = vsub.f32 %v2211_v36, %v532_v46  ;;  %v539_v63 = vsub.f32 %v2215_v39, %v523_v59 }
 0x151   : > { %v701_v10 = vpack.c.bf16 %v1334_v38, %v1333_v54  ;;  %v1341_v51 = vsel %vm663_vm14, 1.0, %v1810_v41  ;;  %vm658_vm13 = vmand %vm642_vm12, %vm562_vm11  ;;  %v547_v44 = vsub.f32 %v2229_v47, %v531_v30  ;;  %vm650_vm1 = vcmp.eq.s32.totalorder %v634_v37, 1 }
 0x152   : > { %v705_v28 = vpack.c.bf16 %v1342_v45, %v1341_v51  ;;  %vm570_vm15 = vcmp.le.f32.partialorder %v548_v61, %v2241_v7  ;;  %vm561_vm4 = vcmp.le.f32.partialorder %v539_v63, %v2241_v7  ;;  %vm641_vm7 = vcmp.eq.s32.totalorder %v2231_v48, 1 }
 0x153   : > { %709 = vst [vmem:[#allocation2 + $0x10] sm:$0xff] %v701_v10  ;;  %v1336_v36 = vsel %vm658_vm13, 1.0, %v1810_v41  ;;  %vm666_vm2 = vmand %vm650_vm1, %vm570_vm15  ;;  %vm569_vm3 = vcmp.le.f32.partialorder %v547_v44, %v2241_v7  ;;  %vm649_vm0 = vcmp.eq.s32.totalorder %v631_v8, 1  ;;  %1252 = sbr.rel (%p1347_p2) target bundleno = 610 (0x262), region = 74 }
 0x154   : > { %713 = vst [vmem:[#allocation2 + $0x30] sm:$0xff] %v705_v28  ;;  %v1344_v39 = vsel %vm666_vm2, 1.0, %v1810_v41  ;;  %vm657_vm6 = vmand %vm641_vm7, %vm561_vm4 }
 0x155   : > { %v1335_v47 = vsel %vm657_vm6, 1.0, %v1810_v41  ;;  %vm665_vm9 = vmand %vm649_vm0, %vm569_vm3 }
 0x156   : > { %v702_v50 = vpack.c.bf16 %v1336_v36, %v1335_v47  ;;  %v1343_v32 = vsel %vm665_vm9, 1.0, %v1810_v41 }
 0x157   : > { %v706_v52 = vpack.c.bf16 %v1344_v39, %v1343_v32 }
 0x158   : > { %710 = vst [vmem:[#allocation2 + $0x18] sm:$0xff] %v702_v50 }
 0x159   : > { %714 = vst [vmem:[#allocation2 + $0x38] sm:$0xff] %v706_v52 }
 0x15a LB: >> { %v725_v48 = vld [vmem:[#allocation2] sm:$0xff]  ;;  %v726_v7 = vld [vmem:[#allocation2 + $0x8] sm:$0xff]  ;;  %v727_v14 = vld [vmem:[#allocation2 + $0x10] sm:$0xff]  ;;  %v1811_v15 = vmov 0.0   ;;  %s722_s27 = sadd.s32 1, %s1806_s27   ;;  %s1806_s27 = sphi %s2333_s27, %s722_s27  }
 0x15b   : >> { %1505 = vmatprep.subr.bf16.mxu0 %v725_v48  ;;  %1633 = vmatprep.subr.bf16.mxu1 %v725_v48  ;;  %v729_v49 = vld [vmem:[#allocation2 + $0x20] sm:$0xff]  ;;  %v730_v43 = vld [vmem:[#allocation2 + $0x28] sm:$0xff]  ;;  %v731_v1 = vld [vmem:[#allocation2 + $0x30] sm:$0xff]  ;;  %p721_p3 = scmp.ge.s32.totalorder %s722_s27, %s1346_s17 }
 0x15c   : >> { %1506 = vmatpush3.bf16.msra.mxu0 %v725_v48  ;;  %1641 = vmatpush3.bf16.msra.mxu1 %v725_v48 }
 0x15d   : >> { %1507 = vmatprep.subr.bf16.mxu0 %v726_v7  ;;  %1634 = vmatprep.subr.bf16.mxu1 %v726_v7 }
 0x15e   : >> { %1521 = vmatprep.mubr.bf16.mxu0 %v725_v48  ;;  %1529 = vmatprep.mubr.bf16.mxu1 %v729_v49 }
 0x15f   : >> { %v728_v27 = vld [vmem:[#allocation2 + $0x18] sm:$0xff] }
 0x160   : >> { %1508 = vmatpush3.bf16.msra.mxu0 %v726_v7  ;;  %1642 = vmatpush3.bf16.msra.mxu1 %v726_v7  ;;  %v732_v19 = vld [vmem:[#allocation2 + $0x38] sm:$0xff] }
 0x161   : >> { %1509 = vmatprep.subr.bf16.mxu0 %v727_v14  ;;  %1635 = vmatprep.subr.bf16.mxu1 %v727_v14 }
 0x164   : >> { %1510 = vmatpush3.bf16.msra.mxu0 %v727_v14  ;;  %1643 = vmatpush3.bf16.msra.mxu1 %v727_v14 }
 0x165   : >> { %1511 = vmatprep.subr.bf16.mxu0 %v728_v27  ;;  %1636 = vmatprep.subr.bf16.mxu1 %v728_v27 }
 0x168   : >> { %1512 = vmatpush3.bf16.msra.mxu0 %v728_v27  ;;  %1644 = vmatpush3.bf16.msra.mxu1 %v728_v27 }
 0x169   : >> { %1513 = vmatprep.subr.bf16.mxu0 %v729_v49  ;;  %1637 = vmatprep.subr.bf16.mxu1 %v729_v49 }
 0x16c   : >> { %1514 = vmatpush3.bf16.msra.mxu0 %v729_v49  ;;  %1645 = vmatpush3.bf16.msra.mxu1 %v729_v49 }
 0x16d   : >> { %1515 = vmatprep.subr.bf16.mxu0 %v730_v43  ;;  %1638 = vmatprep.subr.bf16.mxu1 %v730_v43 }
 0x170   : >> { %1516 = vmatpush3.bf16.msra.mxu0 %v730_v43  ;;  %1646 = vmatpush3.bf16.msra.mxu1 %v730_v43 }
 0x171   : >> { %1517 = vmatprep.subr.bf16.mxu0 %v731_v1  ;;  %1639 = vmatprep.subr.bf16.mxu1 %v731_v1 }
 0x174   : >> { %1518 = vmatpush3.bf16.msra.mxu0 %v731_v1  ;;  %1647 = vmatpush3.bf16.msra.mxu1 %v731_v1 }
 0x175   : >> { %1519 = vmatprep.subr.bf16.mxu0 %v732_v19  ;;  %1640 = vmatprep.subr.bf16.mxu1 %v732_v19 }
 0x178   : >> { %1520 = vmatpush3.bf16.msra.mxu0 %v732_v19  ;;  %1648 = vmatpush3.bf16.msra.mxu1 %v732_v19 }
 0x17b   : >> { %1522 = vmatmul.mubr.bf16.vlgmr.msra.gmra.mrb[0].mxu0 %v726_v7  ;;  %1530 = vmatmul.mubr.bf16.vlgmr.msra.gmra.mrb[0].mxu1 %v730_v43 }
 0x17c   : >> { %1525 = vmatprep.mubr.bf16.mxu0 %v727_v14  ;;  %1533 = vmatprep.mubr.bf16.mxu1 %v731_v1 }
 0x183   : >> { %1526 = vmatmul.mubr.bf16.gmra.mrb[4].mxu0 %v728_v27  ;;  %1534 = vmatmul.mubr.bf16.gmra.mrb[4].mxu1 %v732_v19 }
 0x24e   : >> { %v1523_v3 = vpop.f32.mrb[0].mxu0  ;;  %v1531_v21 = vpop.f32.mrb[0].mxu1 }
 0x24f   : >> { %vm832_vm10 = vcmp.gt.f32.partialorder %v1523_v3, 0.0  ;;  %vm840_vm8 = vcmp.gt.f32.partialorder %v1531_v21, 0.0  ;;  %v767_v42 = vpop.f32.mrb[1].mxu0  ;;  %v799_v24 = vpop.f32.mrb[1].mxu1 }
 0x250   : >> { %v1350_v23 = vsel %vm832_vm10, 1.0, %v1811_v15  ;;  %v1358_v26 = vsel %vm840_vm8, 1.0, %v1811_v15  ;;  %vm830_vm5 = vcmp.gt.f32.partialorder %v767_v42, 0.0  ;;  %vm838_vm11 = vcmp.gt.f32.partialorder %v799_v24, 0.0  ;;  %v1524_v22 = vpop.f32.mrb[2].mxu0  ;;  %v1532_v29 = vpop.f32.mrb[2].mxu1 }
 0x251   : >> { %v1348_v53 = vsel %vm830_vm5, 1.0, %v1811_v15  ;;  %v1356_v11 = vsel %vm838_vm11, 1.0, %v1811_v15  ;;  %vm833_vm12 = vcmp.gt.f32.partialorder %v1524_v22, 0.0  ;;  %vm841_vm14 = vcmp.gt.f32.partialorder %v1532_v29, 0.0  ;;  %v770_v31 = vpop.f32.mrb[3].mxu0  ;;  %v802_v33 = vpop.f32.mrb[3].mxu1 }
 0x252   : >> { %v1351_v40 = vsel %vm833_vm12, 1.0, %v1811_v15  ;;  %v1359_v35 = vsel %vm841_vm14, 1.0, %v1811_v15  ;;  %vm831_vm13 = vcmp.gt.f32.partialorder %v770_v31, 0.0  ;;  %vm839_vm1 = vcmp.gt.f32.partialorder %v802_v33, 0.0 }
 0x253   : >> { %v879_v55 = vpack.c.bf16 %v1351_v40, %v1350_v23  ;;  %v883_v56 = vpack.c.bf16 %v1359_v35, %v1358_v26  ;;  %v1349_v38 = vsel %vm831_vm13, 1.0, %v1811_v15  ;;  %v1357_v34 = vsel %vm839_vm1, 1.0, %v1811_v15 }
 0x254   : >> { %v878_v46 = vpack.c.bf16 %v1349_v38, %v1348_v53  ;;  %v882_v59 = vpack.c.bf16 %v1357_v34, %v1356_v11 }
 0x255   : >> { %887 = vst [vmem:[#allocation2 + $0x8] sm:$0xff] %v879_v55  ;;  %891 = vst [vmem:[#allocation2 + $0x28] sm:$0xff] %v883_v56 }
 0x256   : >> { %886 = vst [vmem:[#allocation2] sm:$0xff] %v878_v46  ;;  %890 = vst [vmem:[#allocation2 + $0x20] sm:$0xff] %v882_v59  ;;  %v1527_v37 = vpop.f32.mrb[4].mxu0  ;;  %v1535_v45 = vpop.f32.mrb[4].mxu1 }
 0x257   : >> { %vm836_vm15 = vcmp.gt.f32.partialorder %v1527_v37, 0.0  ;;  %vm844_vm4 = vcmp.gt.f32.partialorder %v1535_v45, 0.0  ;;  %v783_v30 = vpop.f32.mrb[5].mxu0  ;;  %v815_v54 = vpop.f32.mrb[5].mxu1 }
 0x258   : >> { %v1354_v61 = vsel %vm836_vm15, 1.0, %v1811_v15  ;;  %v1362_v63 = vsel %vm844_vm4, 1.0, %v1811_v15  ;;  %vm834_vm7 = vcmp.gt.f32.partialorder %v783_v30, 0.0  ;;  %vm842_vm2 = vcmp.gt.f32.partialorder %v815_v54, 0.0  ;;  %v1528_v8 = vpop.f32.mrb[6].mxu0  ;;  %v1536_v10 = vpop.f32.mrb[6].mxu1 }
 0x259   : >> { %v1352_v51 = vsel %vm834_vm7, 1.0, %v1811_v15  ;;  %v1360_v44 = vsel %vm842_vm2, 1.0, %v1811_v15  ;;  %vm837_vm3 = vcmp.gt.f32.partialorder %v1528_v8, 0.0  ;;  %vm845_vm0 = vcmp.gt.f32.partialorder %v1536_v10, 0.0  ;;  %v786_v28 = vpop.f32.mrb[7].mxu0  ;;  %v818_v36 = vpop.f32.mrb[7].mxu1 }
 0x25a   : >> { %v1355_v39 = vsel %vm837_vm3, 1.0, %v1811_v15  ;;  %v1363_v47 = vsel %vm845_vm0, 1.0, %v1811_v15  ;;  %vm835_vm6 = vcmp.gt.f32.partialorder %v786_v28, 0.0  ;;  %vm843_vm9 = vcmp.gt.f32.partialorder %v818_v36, 0.0 }
 0x25b   : >> { %v881_v50 = vpack.c.bf16 %v1355_v39, %v1354_v61  ;;  %v885_v32 = vpack.c.bf16 %v1363_v47, %v1362_v63  ;;  %v1353_v52 = vsel %vm835_vm6, 1.0, %v1811_v15  ;;  %v1361_v48 = vsel %vm843_vm9, 1.0, %v1811_v15  ;;  %724 = sbr.rel (!%p721_p3) target bundleno = 346 (0x15a), region = 80 }
 0x25c   : >> { %v880_v7 = vpack.c.bf16 %v1353_v52, %v1352_v51  ;;  %v884_v49 = vpack.c.bf16 %v1361_v48, %v1360_v44 }
 0x25d   : >> { %889 = vst [vmem:[#allocation2 + $0x18] sm:$0xff] %v881_v50  ;;  %893 = vst [vmem:[#allocation2 + $0x38] sm:$0xff] %v885_v32 }
 0x25e   : >> { %888 = vst [vmem:[#allocation2 + $0x10] sm:$0xff] %v880_v7  ;;  %892 = vst [vmem:[#allocation2 + $0x30] sm:$0xff] %v884_v49 }
 0x262 PF: > { %v894_v14 = vld [vmem:[#allocation2] sm:$0xff]  ;;  %v895_v27 = vld [vmem:[#allocation2 + $0x8] sm:$0xff]  ;;  %1721 = vset.pattern.permute.xlu1 %v1809_v0  ;;  %1720 = vset.pattern.permute.xlu0 %v1809_v0  ;;  %s1185_s6 = sld [smem:[#allocation4 + %s1345_s14]]  ;;  %s1380_s8 = sshll.u32 %s1862_s23, 4 }
 0x263   : > { %1537 = vmatprep.subr.bf16.mxu0 %v894_v14  ;;  %1649 = vmatprep.subr.bf16.mxu1 %v894_v14  ;;  %v898_v43 = vld [vmem:[#allocation2 + $0x20] sm:$0xff]  ;;  %v899_v0 = vld [vmem:[#allocation2 + $0x28] sm:$0xff]  ;;  %s1207_s9 = sshll.u32 %s2329_s26, 4  ;;  %s2456_s12 = scalar_lea.hbm %s2505_s4, %s1380_s8  ;;  %s2458_s9 = int_to_ptr.vmem [resolvable:$true] %s1207_s9 }
 0x264   : > { %1538 = vmatpush3.bf16.msra.mxu0 %v894_v14  ;;  %1657 = vmatpush3.bf16.msra.mxu1 %v894_v14  ;;  %s1195_s13 = scalar_lea.sflag [#allocation6], %s194_s5  ;;  %s1734_s14 = scalar_lea.vmem %s2458_s9, 16 }
 0x265   : > { %1539 = vmatprep.subr.bf16.mxu0 %v895_v27  ;;  %1650 = vmatprep.subr.bf16.mxu1 %v895_v27  ;;  %v896_v1 = vld [vmem:[#allocation2 + $0x10] sm:$0xff]  ;;  %p1735_p4 = scmp.ne.s32.totalorder %s2458_s9, %s1734_s14  ;;  %s1812_s23 = smov [#allocation5]  }
 0x266   : > { %1553 = vmatprep.mubr.bf16.mxu0 %v894_v14  ;;  %1561 = vmatprep.mubr.bf16.mxu1 %v898_v43  ;;  %s1738_s15 = sshll.u32 %s1812_s23, 4  ;;  %s1739_s15 = int_to_ptr.vmem [resolvable:$false] %s1738_s15 }
 0x267   : > { %1027 = vperm.xlu1 %1721, %v2076_v58   ;;  %1017 = vperm.xlu0 %1720, %v2080_v60   ;;  %v897_v19 = vld [vmem:[#allocation2 + $0x18] sm:$0xff]  ;;  %p1736_p5 = pnand %p1735_p4, %p1879_p10  ;;  %s1740_s16 = scalar_lea.vmem %s1739_s15, 32 }
 0x268   : > { %1540 = vmatpush3.bf16.msra.mxu0 %v895_v27  ;;  %1658 = vmatpush3.bf16.msra.mxu1 %v895_v27  ;;  %v901_v58 = vld [vmem:[#allocation2 + $0x38] sm:$0xff]  ;;  %s1186_s7 = scvt.s32.f32 %s1185_s6  ;;  %p1741_p7 = scmp.lt.s32.totalorder %s2458_s9, %s1739_s15 }
 0x269   : > { %1541 = vmatprep.subr.bf16.mxu0 %v896_v1  ;;  %1651 = vmatprep.subr.bf16.mxu1 %v896_v1  ;;  %p1737_p6 = pneg %p1736_p5  ;;  %p1742_p8 = scmp.lt.s32.totalorder %s1740_s16, %s1734_s14 }
 0x26b   : > { %1032 = vperm.xlu1 %1721, %v2086_v62   ;;  %1022 = vperm.xlu0 %1720, %v2064_v57   ;;  %v900_v57 = vld [vmem:[#allocation2 + $0x30] sm:$0xff]  ;;  %p1743_p9 = por %p1742_p8, %p1741_p7 }
 0x26c   : > { %1542 = vmatpush3.bf16.msra.mxu0 %v896_v1  ;;  %1659 = vmatpush3.bf16.msra.mxu1 %v896_v1 }
 0x26d   : > { %1543 = vmatprep.subr.bf16.mxu0 %v897_v19  ;;  %1652 = vmatprep.subr.bf16.mxu1 %v897_v19  ;;  %p1744_p12 = pnand %p1743_p9, %p1737_p6 }
 0x26f   : > { %1042 = vperm.xlu1 %1721, %v2120_v12   ;;  %1037 = vperm.xlu0 %1720, %v2103_v5  }
 0x270   : > { %1544 = vmatpush3.bf16.msra.mxu0 %v897_v19  ;;  %1660 = vmatpush3.bf16.msra.mxu1 %v897_v19 }
 0x271   : > { %1545 = vmatprep.subr.bf16.mxu0 %v898_v43  ;;  %1653 = vmatprep.subr.bf16.mxu1 %v898_v43 }
 0x273   : > { %1052 = vperm.xlu1 %1721, %v2147_v20   ;;  %1047 = vperm.xlu0 %1720, %v2129_v17  }
 0x274   : > { %1546 = vmatpush3.bf16.msra.mxu0 %v898_v43  ;;  %1661 = vmatpush3.bf16.msra.mxu1 %v898_v43 }
 0x275   : > { %1547 = vmatprep.subr.bf16.mxu0 %v899_v0  ;;  %1654 = vmatprep.subr.bf16.mxu1 %v899_v0 }
 0x277   : > { %1062 = vperm.xlu1 %1721, %v2095_v2   ;;  %1057 = vperm.xlu0 %1720, %v2161_v4  }
 0x278   : > { %1548 = vmatpush3.bf16.msra.mxu0 %v899_v0  ;;  %1662 = vmatpush3.bf16.msra.mxu1 %v899_v0 }
 0x279   : > { %1549 = vmatprep.subr.bf16.mxu0 %v900_v57  ;;  %1655 = vmatprep.subr.bf16.mxu1 %v900_v57 }
 0x27b   : > { %1072 = vperm.xlu1 %1721, %v2109_v9   ;;  %1067 = vperm.xlu0 %1720, %v2174_v6  }
 0x27c   : > { %1550 = vmatpush3.bf16.msra.mxu0 %v900_v57  ;;  %1663 = vmatpush3.bf16.msra.mxu1 %v900_v57 }
 0x27d   : > { %1551 = vmatprep.subr.bf16.mxu0 %v901_v58  ;;  %1656 = vmatprep.subr.bf16.mxu1 %v901_v58 }
 0x27f   : > { %1082 = vperm.xlu1 %1721, %v2123_v13   ;;  %1077 = vperm.xlu0 %1720, %v2183_v16  }
 0x280   : > { %1552 = vmatpush3.bf16.msra.mxu0 %v901_v58  ;;  %1664 = vmatpush3.bf16.msra.mxu1 %v901_v58 }
 0x283   : > { %1554 = vmatmul.mubr.bf16.vlgmr.msra.gmra.mrb[0].mxu0 %v895_v27  ;;  %1562 = vmatmul.mubr.bf16.vlgmr.msra.gmra.mrb[0].mxu1 %v899_v0 }
 0x284   : > { %1557 = vmatprep.mubr.bf16.mxu0 %v896_v1  ;;  %1565 = vmatprep.mubr.bf16.mxu1 %v900_v57 }
 0x285   : > { %1092 = vperm.xlu1 %1721, %v2132_v18   ;;  %1087 = vperm.xlu0 %1720, %v2188_v25  }
 0x28b   : > { %1558 = vmatmul.mubr.bf16.gmra.mrb[4].mxu0 %v897_v19  ;;  %1566 = vmatmul.mubr.bf16.gmra.mrb[4].mxu1 %v901_v58 }
 0x2e6   : > { %v1018_v60 = vpop.permute.xlu0 %1017  ;;  %v1028_v62 = vpop.permute.xlu1 %1027 }
 0x2ea   : > { %v2361_v2 = vpop.permute.xlu0 %1022  ;;  %v1033_v5 = vpop.permute.xlu1 %1032 }
 0x2ee   : > { %v1038_v9 = vpop.permute.xlu0 %1037  ;;  %v2363_v12 = vpop.permute.xlu1 %1042 }
 0x2f2   : > { %v1048_v13 = vpop.permute.xlu0 %1047  ;;  %v1053_v17 = vpop.permute.xlu1 %1052 }
 0x2f6   : > { %v1058_v20 = vpop.permute.xlu0 %1057  ;;  %v2365_v4 = vpop.permute.xlu1 %1062 }
 0x2fa   : > { %v1068_v3 = vpop.permute.xlu0 %1067  ;;  %v1073_v24 = vpop.permute.xlu1 %1072 }
 0x2fe   : > { %v1078_v26 = vpop.permute.xlu0 %1077  ;;  %v1083_v34 = vpop.permute.xlu1 %1082 }
 0x304   : > { %v1088_v36 = vpop.permute.xlu0 %1087  ;;  %v1093_v1 = vpop.permute.xlu1 %1092 }
 0x356   : > { %v1555_v6 = vpop.f32.mrb[0].mxu0  ;;  %v2367_v16 = vpop.f32.mrb[0].mxu1 }
 0x357   : > { %v936_v18 = vpop.f32.mrb[1].mxu0  ;;  %v2369_v25 = vpop.f32.mrb[1].mxu1  ;;  %vm1001_vm10 = vcmp.gt.f32.partialorder %v1555_v6, 0.0  ;;  %vm1009_vm5 = vcmp.gt.f32.partialorder %v2367_v16, 0.0 }
 0x358   : > { %v1556_v21 = vpop.f32.mrb[2].mxu0  ;;  %v2371_v42 = vpop.f32.mrb[2].mxu1  ;;  %vm999_vm8 = vcmp.gt.f32.partialorder %v936_v18, 0.0  ;;  %v1097_v22 = vsel %vm1001_vm10, %v1028_v62, 1e+09  ;;  %vm1007_vm12 = vcmp.gt.f32.partialorder %v2369_v25, 0.0 }
 0x359   : > { %v939_v15 = vpop.f32.mrb[3].mxu0  ;;  %v2373_v23 = vpop.f32.mrb[3].mxu1  ;;  %v1364_v29 = vsel %vm999_vm8, 1.0, %v1810_v41  ;;  %v1105_v11 = vsel %vm1009_vm5, %v1068_v3, 1e+09  ;;  %vm1002_vm14 = vcmp.gt.f32.partialorder %v1556_v21, 0.0 }
 0x35a   : > { %vm1000_vm11 = vcmp.gt.f32.partialorder %v939_v15, 0.0  ;;  %v1366_v35 = vsel %vm1001_vm10, 1.0, %v1810_v41  ;;  %v1095_v55 = vsel %vm999_vm8, %v1018_v60, 1e+09  ;;  %v1103_v46 = vsel %vm1007_vm12, %v1058_v20, 1e+09 }
 0x35b   : > { %v1365_v53 = vsel %vm1000_vm11, 1.0, %v1810_v41  ;;  %vm1010_vm1 = vcmp.gt.f32.partialorder %v2371_v42, 0.0  ;;  %v1367_v30 = vsel %vm1002_vm14, 1.0, %v1810_v41  ;;  %v1098_v8 = vsel %vm1002_vm14, %v1033_v5, 1e+09 }
 0x35c   : > { %v1164_v31 = vadd.f32 %v1365_v53, %v1364_v29  ;;  %v1106_v50 = vsel %vm1010_vm1, %v1073_v24, 1e+09  ;;  %v1096_v27 = vsel %vm1000_vm11, %v2361_v2, 1e+09  ;;  %vm1008_vm0 = vcmp.gt.f32.partialorder %v2373_v23, 0.0 }
 0x35d   : > { %v1104_v2 = vsel %vm1008_vm0, %v2365_v4, 1e+09  ;;  %v1374_v25 = vsel %vm1009_vm5, 1.0, %v1810_v41 }
 0x35e   : > { %v1559_v33 = vpop.f32.mrb[4].mxu0  ;;  %v2384_v40 = vpop.f32.mrb[4].mxu1  ;;  %v1165_v59 = vadd.f32 %v1366_v35, %v1164_v31  ;;  %v1375_v31 = vsel %vm1010_vm1, 1.0, %v1810_v41 }
 0x35f   : > { %vm1005_vm13 = vcmp.gt.f32.partialorder %v1559_v33, 0.0  ;;  %v952_v56 = vpop.f32.mrb[5].mxu0  ;;  %v2389_v38 = vpop.f32.mrb[5].mxu1  ;;  %vm1013_vm15 = vcmp.gt.f32.partialorder %v2384_v40, 0.0 }
 0x360   : > { %v1101_v37 = vsel %vm1005_vm13, %v1048_v13, 1e+09  ;;  %v1560_v45 = vpop.f32.mrb[6].mxu0  ;;  %vm1003_vm4 = vcmp.gt.f32.partialorder %v952_v56, 0.0  ;;  %v2398_v61 = vpop.f32.mrb[6].mxu1  ;;  %v1166_v44 = vadd.f32 %v1367_v30, %v1165_v59  ;;  %vm1011_vm7 = vcmp.gt.f32.partialorder %v2389_v38, 0.0 }
 0x361   : > { %v1113_v54 = vmin.f32 %v1097_v22, %v1101_v37  ;;  %v955_v63 = vpop.f32.mrb[7].mxu0  ;;  %v1099_v10 = vsel %vm1003_vm4, %v1038_v9, 1e+09  ;;  %v1368_v51 = vsel %vm1003_vm4, 1.0, %v1810_v41  ;;  %v987_v28 = vpop.f32.mrb[7].mxu1  ;;  %vm1006_vm2 = vcmp.gt.f32.partialorder %v1560_v45, 0.0 }
 0x362   : > { %v1111_v47 = vmin.f32 %v1095_v55, %v1099_v10  ;;  %v1109_v32 = vsel %vm1013_vm15, %v1088_v36, 1e+09  ;;  %v1167_v52 = vadd.f32 %v1368_v51, %v1166_v44  ;;  %v1102_v48 = vsel %vm1006_vm2, %v1053_v17, 1e+09 }
 0x363   : > { %v1117_v39 = vmin.f32 %v1113_v54, %v1105_v11  ;;  %v1114_v14 = vmin.f32 %v1098_v8, %v1102_v48  ;;  %vm1014_vm3 = vcmp.gt.f32.partialorder %v2398_v61, 0.0  ;;  %v1107_v43 = vsel %vm1011_vm7, %v1078_v26, 1e+09 }
 0x364   : > { %v1115_v49 = vmin.f32 %v1111_v47, %v1103_v46  ;;  %vm1004_vm6 = vcmp.gt.f32.partialorder %v955_v63, 0.0  ;;  %v1110_v60 = vsel %vm1014_vm3, %v1093_v1, 1e+09  ;;  %vm1012_vm9 = vcmp.gt.f32.partialorder %v987_v28, 0.0 }
 0x365   : > { %v1121_v7 = vmin.f32 %v1117_v39, %v1109_v32  ;;  %v1118_v0 = vmin.f32 %v1114_v14, %v1106_v50  ;;  %v1100_v57 = vsel %vm1004_vm6, %v2363_v12, 1e+09  ;;  %v1369_v58 = vsel %vm1004_vm6, 1.0, %v1810_v41 }
 0x366   : > { %v1119_v19 = vmin.f32 %v1115_v49, %v1107_v43  ;;  %v1112_v62 = vmin.f32 %v1096_v27, %v1100_v57  ;;  %v1168_v5 = vadd.f32 %v1369_v58, %v1167_v52  ;;  %v1370_v9 = vsel %vm1005_vm13, 1.0, %v1810_v41 }
 0x367   : > { %v1122_v13 = vmin.f32 %v1118_v0, %v1110_v60  ;;  %v1372_v12 = vsel %vm1007_vm12, 1.0, %v1810_v41  ;;  %v1371_v6 = vsel %vm1006_vm2, 1.0, %v1810_v41  ;;  %v1108_v3 = vsel %vm1012_vm9, %v1083_v34, 1e+09 }
 0x368   : > { %v1169_v17 = vadd.f32 %v1370_v9, %v1168_v5  ;;  %v1116_v20 = vmin.f32 %v1112_v62, %v1104_v2  ;;  %v1373_v26 = vsel %vm1008_vm0, 1.0, %v1810_v41  ;;  %v1376_v33 = vsel %vm1011_vm7, 1.0, %v1810_v41 }
 0x369   : > { %v1124_v18 = vmin.f32 %v1121_v7, %v1122_v13  ;;  %v1377_v56 = vsel %vm1012_vm9, 1.0, %v1810_v41  ;;  %v1378_v16 = vsel %vm1013_vm15, 1.0, %v1810_v41  ;;  %v1379_v42 = vsel %vm1014_vm3, 1.0, %v1810_v41 }
 0x36a   : > { %v1170_v21 = vadd.f32 %v1371_v6, %v1169_v17  ;;  %v1120_v24 = vmin.f32 %v1116_v20, %v1108_v3  ;;  %v1188_v51 = vstv %s1186_s7 }
 0x36c   : > { %v1171_v15 = vadd.f32 %v1372_v12, %v1170_v21  ;;  %v1123_v4 = vmin.f32 %v1119_v19, %v1120_v24 }
 0x36e   : > { %v1125_v22 = vmin.f32 %v1123_v4, %v1124_v18  ;;  %v1172_v29 = vadd.f32 %v1373_v26, %v1171_v15 }
 0x370   : > { %v1126_v53 = vrot.slane %v1125_v22, 4  ;;  %v1173_v11 = vadd.f32 %v1374_v25, %v1172_v29 }
 0x372   : > { %v1174_v35 = vadd.f32 %v1375_v31, %v1173_v11  ;;  %v1127_v23 = vmin.f32 %v1125_v22, %v1126_v53 }
 0x374   : > { %v1175_v55 = vadd.f32 %v1376_v33, %v1174_v35  ;;  %v1128_v46 = vrot.slane %v1127_v23, 2 }
 0x376   : > { %v1176_v34 = vadd.f32 %v1377_v56, %v1175_v55  ;;  %v1129_v45 = vmin.f32 %v1127_v23, %v1128_v46 }
 0x378   : > { %v1177_v59 = vadd.f32 %v1378_v16, %v1176_v34  ;;  %v1130_v63 = vrot.slane %v1129_v45, 1 }
 0x37a   : > { %v1178_v38 = vadd.f32 %v1379_v42, %v1177_v59  ;;  %v1131_v8 = vmin.f32 %v1129_v45, %v1130_v63 }
 0x37c   : > { %v1179_v37 = vrot.slane %v1178_v38, 4  ;;  %vm1187_vm10 = vcmp.lt.f32.partialorder %v1131_v8, 1e+09 }
 0x37e   : > { %v1180_v30 = vadd.f32 %v1179_v37, %v1178_v38 }
 0x380   : > { %v1181_v54 = vrot.slane %v1180_v30, 2 }
 0x382   : > { %v1182_v40 = vadd.f32 %v1181_v54, %v1180_v30 }
 0x384   : > { %v1183_v10 = vrot.slane %v1182_v40, 1 }
 0x386   : > { %v1184_v61 = vadd.f32 %v1183_v10, %v1182_v40 }
 0x388   : > { %vm1189_vm8 = vcmp.ge.f32.partialorder %v1184_v61, %v1188_v51 }
 0x389   : > { %vm1190_vm5 = vmand %vm1187_vm10, %vm1189_vm8 }
 0x38a   : > { %v1191_v41 = vsel %vm1190_vm5, %v1131_v8, -1.0 }
 0x38b   : > { %v1665_v44 = vtrunc.f32 %v1191_v41 }
 0x38d   : > { %v1666_v28 = vcvt.f32.s32 %v1665_v44 }
 0x38f   : > { %1193 = vst [vmem:[%s2329_s26] sm:$0x1] %v1666_v28 }
 0x390   : > { %1747 = shalt.err (!%p1744_p12)
}
 0x391   : > { %s1748_s5 = scalar_lea.hbm %s2456_s12, 16  ;;  %s1752_s19 = scalar_lea.hbm %s2505_s4, 128 }
 0x392   : > { %p1749_p13 = scmp.ne.s32.totalorder %s2456_s12, %s1748_s5  ;;  %p1753_p2 = scmp.lt.u32.totalorder %s2456_s12, %s2505_s4 }
 0x393   : > { %p1754_p3 = scmp.lt.u32.totalorder %s1752_s19, %s1748_s5  ;;  %p1756_p5 = scmp.lt.u32.totalorder %s1748_s5, %s2456_s12 }
 0x394   : > { %p1750_p0 = pnand %p1749_p13, %p1879_p10 }
 0x395   : > { %p1755_p4 = por %p1754_p3, %p1753_p2 }
 0x396   : > { %p1751_p1 = pneg %p1750_p0 }
 0x397   : > { %p1757_p6 = por %p1756_p5, %p1755_p4 }
 0x399   : > { %p1758_p7 = pnand %p1757_p6, %p1751_p1 }
 0x39b   : > { %1761 = shalt.err (!%p1758_p7)
}
 0x39c   : > { %1667 = dma.vmem_to_hbm [thread:$0]  (%p1879_p10), %s2458_s9, 16, %s2456_s12, %s1195_s13  }
 0x39d PF: > { %p1673_p8 = scmp.ge.s32.totalorder %s1802_s22, 2  ;;  %s1219_s27 = sand.u32 1, %s1790_s20  }
 0x39e   : > { %s1220_s6 = scalar_lea.sflag [#allocation6], %s1219_s27 }
 0x39f   : > { %p1670_p9 = pnand %p1673_p8, %p1883_p11 }
 0x3a1   : > { %1785 = dma.done.wait (!%p1670_p9), %s1220_s6, 16  }
 0x3a2   : > { %1787 = vsyncadd (!%p1670_p9), %s1220_s6, 4294967280  ;;  %p20_p12 = scmp.ge.s32.totalorder %s1866_s25, 10   ;;  %s2514_s20 = smov %s1794_s21 }
 0x3a3   : > { %s2515_s21 = smov %s1798_s0  ;;  %s2516_s0 = smov %s1877_s28 }
 0x3a4   : > { %s2517_s22 = smov %s1866_s25  ;;  %22 = sbr.rel (!%p20_p12) target bundleno = 18 (0x12), region = 91 }
 0x3ab   :  { %1224 = vsyncpa [#allocation6], 1 }
 0x3ac   :  { %1226 = vsyncpa [#allocation6 + $0x1], 1 }

</bundles_post_ra>
